<compile_context>
chip_gen: v7x
topology: tpu7x:2x2x1
jax: 0.10.0
libtpu: 0.0.40
codegen_flags: <defaults>
</compile_context>

<pallas_src>
import jax
import jax.numpy as jnp
from jax.experimental import pallas as pl
from jax.experimental.pallas import tpu as pltpu


H1, H2, OUT = 64, 32, 16
TILE_B = 8192                 # per-step batch tile (see header for budget)
VMEM_LIMIT_BYTES = 48 << 20   # explicit scoped-VMEM budget (v7x-safe headroom)


def _round_up(x, m):
    return (x + m - 1) // m * m


def mlp_kernel(x_ref, w1_ref, b1_ref, w2_ref, b2_ref, w3_ref, b3_ref, o_ref):
    # x_ref: (TB, F) f32 (input dtype); weights (in, out) compute dtype;
    # biases (1, out) f32; o_ref: (TB, 16) out_dtype.
    # Cast X in-kernel (VPU op, hidden under the streaming DMA) instead of a
    # separate wrapper-side XLA convert pass over HBM.
    x = x_ref[...].astype(w1_ref.dtype)
    h1 = jnp.dot(x, w1_ref[...], preferred_element_type=jnp.float32)       # (TB, 64)
    h1 = jnp.maximum(h1 + b1_ref[...], 0.0)                                # ReLU in f32
    h2 = jnp.dot(h1.astype(w2_ref.dtype), w2_ref[...],
                 preferred_element_type=jnp.float32)                       # (TB, 32)
    h2 = jnp.maximum(h2 + b2_ref[...], 0.0)
    h3 = jnp.dot(h2.astype(w3_ref.dtype), w3_ref[...],
                 preferred_element_type=jnp.float32)                       # (TB, 16)
    o_ref[...] = (h3 + b3_ref[...]).astype(o_ref.dtype)


def book_titanic_forward(x, params, *, tile_b=TILE_B,
                         compute_dtype=jnp.bfloat16,
                         out_dtype=jnp.float32,
                         vmem_limit_bytes=VMEM_LIMIT_BYTES):
    """x: (B, F) float32. params: (in,out) weights, (1,out) biases."""
    w1, b1, w2, b2, w3, b3 = (
        params["w1"], params["b1"], params["w2"],
        params["b2"], params["w3"], params["b3"],
    )
    B, F = x.shape
    out_dim = w3.shape[1]

    if B == 0:
        return jnp.zeros((0, out_dim), dtype=out_dtype)

    # Weights are tiny and cast once here; biases & accumulation stay f32.
    # X is deliberately NOT cast here (see kernel).
    w1_c, w2_c, w3_c = (w.astype(compute_dtype) for w in (w1, w2, w3))
    b1_f, b2_f, b3_f = (b.astype(jnp.float32) for b in (b1, b2, b3))

    # Adaptive tile: never far bigger than the batch, tail padding capped at a
    # few percent, and always a multiple of 256 (f32 8-row / bf16 16-row
    # sublane alignment) even for user-supplied tile_b.
    tile_b = max(256, _round_up(min(tile_b, max(B, 1)), 256))
    n_tiles = pl.cdiv(B, tile_b)
    tile_b = _round_up(pl.cdiv(B, n_tiles), 256)
    b_pad = _round_up(B, tile_b)
    x_p = jnp.pad(x, ((0, b_pad - B), (0, 0))) if b_pad != B else x

    grid = (b_pad // tile_b,)

    flops = 2 * b_pad * (F * H1 + H1 * H2 + H2 * OUT)
    bytes_accessed = (
        b_pad * F * x_p.dtype.itemsize                          # X in (f32, single pass)
        + b_pad * out_dim * jnp.dtype(out_dtype).itemsize       # out
        + sum(w.size * w.dtype.itemsize for w in (w1_c, w2_c, w3_c))
        + sum(b.size * 4 for b in (b1_f, b2_f, b3_f))
    )

    def resident(arr):  # whole-array block, constant index -> DMA'd once, VMEM-resident
        return pl.BlockSpec(arr.shape, lambda i: (0, 0))

    out = pl.pallas_call(
        mlp_kernel,
        out_shape=jax.ShapeDtypeStruct((b_pad, out_dim), out_dtype),
        grid=grid,
        in_specs=[
            pl.BlockSpec((tile_b, F), lambda i: (i, 0)),   # X: streamed per batch tile
            resident(w1_c), resident(b1_f),
            resident(w2_c), resident(b2_f),
            resident(w3_c), resident(b3_f),
        ],
        out_specs=pl.BlockSpec((tile_b, out_dim), lambda i: (i, 0)),
        compiler_params=pltpu.CompilerParams(
            dimension_semantics=("parallel",),
            vmem_limit_bytes=vmem_limit_bytes,
        ),
        cost_estimate=pl.CostEstimate(
            flops=flops, transcendentals=0, bytes_accessed=bytes_accessed),
    )(x_p, w1_c, b1_f, w2_c, b2_f, w3_c, b3_f)

    return out[:B] if b_pad != B else out


def init_params(key, in_features, h1=H1, h2=H2, out=OUT):
    """PyTorch-Linear-style init (uniform +/- 1/sqrt(fan_in)); weights stored
    pre-transposed as (in, out)."""
    ks = jax.random.split(key, 6)

    def lin(kw, kb, fan_in, fan_out):
        bound = 1.0 / jnp.sqrt(jnp.float32(fan_in))
        w = jax.random.uniform(kw, (fan_in, fan_out), jnp.float32, -bound, bound)
        b = jax.random.uniform(kb, (1, fan_out), jnp.float32, -bound, bound)
        return w, b

    w1, b1 = lin(ks[0], ks[1], in_features, h1)
    w2, b2 = lin(ks[2], ks[3], h1, h2)
    w3, b3 = lin(ks[4], ks[5], h2, out)
    return {"w1": w1, "b1": b1, "w2": w2, "b2": b2, "w3": w3, "b3": b3}


if __name__ == "__main__":
    key = jax.random.PRNGKey(0)
    k_x, k_p = jax.random.split(key)

    batch, in_features = 8, 12  # Titanic-style tabular features
    x = jax.random.normal(k_x, (batch, in_features), dtype=jnp.float32)
    params = init_params(k_p, in_features)

    out = book_titanic_forward(x, params)
    out = jax.block_until_ready(out)
    assert out.shape == (batch, OUT)
    assert out.dtype == jnp.float32

    # Reference mirroring the kernel's mixed precision (bf16 operands for the
    # matmuls, f32 accumulation / bias / ReLU).
    def q(a):
        return a.astype(jnp.bfloat16).astype(jnp.float32)

    h = jnp.maximum(q(x) @ q(params["w1"]) + params["b1"], 0.0)
    h = jnp.maximum(q(h) @ q(params["w2"]) + params["b2"], 0.0)
    ref_bf16 = q(h) @ q(params["w3"]) + params["b3"]
    assert jnp.allclose(out, ref_bf16, atol=1e-4, rtol=1e-4)

    # Coarse sanity check against the pure-f32 reference (bf16 rounding only).
    hf = jnp.maximum(x @ params["w1"] + params["b1"], 0.0)
    hf = jnp.maximum(hf @ params["w2"] + params["b2"], 0.0)
    ref_f32 = hf @ params["w3"] + params["b3"]
    assert jnp.allclose(out, ref_f32, atol=5e-2, rtol=5e-2)

    print("KERNEL_OK")
</pallas_src>

<mosaic_0001>
module attributes {stable_mosaic.version = 11 : i64} {
  func.func @mlp_kernel(%arg0: i32, %arg1: memref<256x12xf32, #tpu.memory_space<vmem>>, %arg2: memref<12x64xbf16, #tpu.memory_space<vmem>>, %arg3: memref<1x64xf32, #tpu.memory_space<vmem>>, %arg4: memref<64x32xbf16, #tpu.memory_space<vmem>>, %arg5: memref<1x32xf32, #tpu.memory_space<vmem>>, %arg6: memref<32x16xbf16, #tpu.memory_space<vmem>>, %arg7: memref<1x16xf32, #tpu.memory_space<vmem>>, %arg8: memref<256x16xf32, #tpu.memory_space<vmem>>) attributes {dimension_semantics = [#tpu.dimension_semantics<parallel>], iteration_bounds = array<i64: 1>, scalar_prefetch = 0 : i64, scratch_operands = 0 : i64, tpu.core_type = #tpu.core_type<tc>, window_params = [{transform_indices = @transform_0, window_bounds = array<i64: 256, 12>}, {pipeline_mode = #tpu.pipeline_mode<synchronous>, transform_indices = @transform_1, window_bounds = array<i64: 12, 64>}, {pipeline_mode = #tpu.pipeline_mode<synchronous>, transform_indices = @transform_2, window_bounds = array<i64: 1, 64>}, {pipeline_mode = #tpu.pipeline_mode<synchronous>, transform_indices = @transform_3, window_bounds = array<i64: 64, 32>}, {pipeline_mode = #tpu.pipeline_mode<synchronous>, transform_indices = @transform_4, window_bounds = array<i64: 1, 32>}, {pipeline_mode = #tpu.pipeline_mode<synchronous>, transform_indices = @transform_5, window_bounds = array<i64: 32, 16>}, {pipeline_mode = #tpu.pipeline_mode<synchronous>, transform_indices = @transform_6, window_bounds = array<i64: 1, 16>}, {transform_indices = @transform_7, window_bounds = array<i64: 256, 16>}]} {
    %c0 = arith.constant 0 : index
    %c0_0 = arith.constant 0 : index
    %0 = vector.load %arg1[%c0, %c0_0] : memref<256x12xf32, #tpu.memory_space<vmem>>, vector<256x12xf32>
    %1 = arith.truncf %0 : vector<256x12xf32> to vector<256x12xbf16>
    %c0_1 = arith.constant 0 : index
    %c0_2 = arith.constant 0 : index
    %2 = vector.load %arg2[%c0_1, %c0_2] : memref<12x64xbf16, #tpu.memory_space<vmem>>, vector<12x64xbf16>
    %cst = arith.constant dense<0.000000e+00> : vector<256x64xf32>
    %3 = tpu.matmul %1, %2, %cst {dimension_numbers = #tpu.dot_dimension_numbers<[1], [0], [0], [1], [0, 0, 1, 1], [], []>} : vector<256x12xbf16>, vector<12x64xbf16>, vector<256x64xf32> -> vector<256x64xf32>
    %c0_3 = arith.constant 0 : index
    %c0_4 = arith.constant 0 : index
    %4 = vector.load %arg3[%c0_3, %c0_4] : memref<1x64xf32, #tpu.memory_space<vmem>>, vector<1x64xf32>
    %5 = vector.broadcast %4 : vector<1x64xf32> to vector<256x64xf32>
    %6 = arith.addf %3, %5 : vector<256x64xf32>
    %cst_5 = arith.constant 0.000000e+00 : f32
    %7 = vector.broadcast %cst_5 : f32 to vector<256x64xf32>
    %8 = arith.maximumf %6, %7 : vector<256x64xf32>
    %9 = arith.truncf %8 : vector<256x64xf32> to vector<256x64xbf16>
    %c0_6 = arith.constant 0 : index
    %c0_7 = arith.constant 0 : index
    %10 = vector.load %arg4[%c0_6, %c0_7] : memref<64x32xbf16, #tpu.memory_space<vmem>>, vector<64x32xbf16>
    %cst_8 = arith.constant dense<0.000000e+00> : vector<256x32xf32>
    %11 = tpu.matmul %9, %10, %cst_8 {dimension_numbers = #tpu.dot_dimension_numbers<[1], [0], [0], [1], [0, 0, 1, 1], [], []>} : vector<256x64xbf16>, vector<64x32xbf16>, vector<256x32xf32> -> vector<256x32xf32>
    %c0_9 = arith.constant 0 : index
    %c0_10 = arith.constant 0 : index
    %12 = vector.load %arg5[%c0_9, %c0_10] : memref<1x32xf32, #tpu.memory_space<vmem>>, vector<1x32xf32>
    %13 = vector.broadcast %12 : vector<1x32xf32> to vector<256x32xf32>
    %14 = arith.addf %11, %13 : vector<256x32xf32>
    %cst_11 = arith.constant 0.000000e+00 : f32
    %15 = vector.broadcast %cst_11 : f32 to vector<256x32xf32>
    %16 = arith.maximumf %14, %15 : vector<256x32xf32>
    %17 = arith.truncf %16 : vector<256x32xf32> to vector<256x32xbf16>
    %c0_12 = arith.constant 0 : index
    %c0_13 = arith.constant 0 : index
    %18 = vector.load %arg6[%c0_12, %c0_13] : memref<32x16xbf16, #tpu.memory_space<vmem>>, vector<32x16xbf16>
    %cst_14 = arith.constant dense<0.000000e+00> : vector<256x16xf32>
    %19 = tpu.matmul %17, %18, %cst_14 {dimension_numbers = #tpu.dot_dimension_numbers<[1], [0], [0], [1], [0, 0, 1, 1], [], []>} : vector<256x32xbf16>, vector<32x16xbf16>, vector<256x16xf32> -> vector<256x16xf32>
    %c0_15 = arith.constant 0 : index
    %c0_16 = arith.constant 0 : index
    %20 = vector.load %arg7[%c0_15, %c0_16] : memref<1x16xf32, #tpu.memory_space<vmem>>, vector<1x16xf32>
    %21 = vector.broadcast %20 : vector<1x16xf32> to vector<256x16xf32>
    %22 = arith.addf %19, %21 : vector<256x16xf32>
    %c0_17 = arith.constant 0 : index
    %c0_18 = arith.constant 0 : index
    %23 = vector.load %arg8[%c0_17, %c0_18] : memref<256x16xf32, #tpu.memory_space<vmem>>, vector<256x16xf32>
    tpu.vector_store %arg8[%c0_17, %c0_18], %22 {strides = array<i32>} : memref<256x16xf32, #tpu.memory_space<vmem>>, vector<256x16xf32>,
    return
  }
  func.func @transform_0(%arg0: i32) -> (i32, i32) {
    %c0_i32 = arith.constant 0 : i32
    %c0_i32_0 = arith.constant 0 : i32
    return %arg0, %c0_i32 : i32, i32
  }
  func.func @transform_1(%arg0: i32) -> (i32, i32) {
    %c0_i32 = arith.constant 0 : i32
    %c0_i32_0 = arith.constant 0 : i32
    %c0_i32_1 = arith.constant 0 : i32
    return %c0_i32, %c0_i32_0 : i32, i32
  }
  func.func @transform_2(%arg0: i32) -> (i32, i32) {
    %c0_i32 = arith.constant 0 : i32
    %c0_i32_0 = arith.constant 0 : i32
    %c0_i32_1 = arith.constant 0 : i32
    return %c0_i32, %c0_i32_0 : i32, i32
  }
  func.func @transform_3(%arg0: i32) -> (i32, i32) {
    %c0_i32 = arith.constant 0 : i32
    %c0_i32_0 = arith.constant 0 : i32
    %c0_i32_1 = arith.constant 0 : i32
    return %c0_i32, %c0_i32_0 : i32, i32
  }
  func.func @transform_4(%arg0: i32) -> (i32, i32) {
    %c0_i32 = arith.constant 0 : i32
    %c0_i32_0 = arith.constant 0 : i32
    %c0_i32_1 = arith.constant 0 : i32
    return %c0_i32, %c0_i32_0 : i32, i32
  }
  func.func @transform_5(%arg0: i32) -> (i32, i32) {
    %c0_i32 = arith.constant 0 : i32
    %c0_i32_0 = arith.constant 0 : i32
    %c0_i32_1 = arith.constant 0 : i32
    return %c0_i32, %c0_i32_0 : i32, i32
  }
  func.func @transform_6(%arg0: i32) -> (i32, i32) {
    %c0_i32 = arith.constant 0 : i32
    %c0_i32_0 = arith.constant 0 : i32
    %c0_i32_1 = arith.constant 0 : i32
    return %c0_i32, %c0_i32_0 : i32, i32
  }
  func.func @transform_7(%arg0: i32) -> (i32, i32) {
    %c0_i32 = arith.constant 0 : i32
    %c0_i32_0 = arith.constant 0 : i32
    return %arg0, %c0_i32 : i32, i32
  }
}

</mosaic_0001>

<bundles_post_ra>
// kernel: tpu_custom_call.1
= control target key start
LH: loop header
LB: loop body
LE: loop exit
PB: predicated region body
PF: predicated region fallthrough
CT: control target
= control target key end

     0   :  { %vm138_vm0 = vcmask 1045504   ;;  %vm89_vm1 = vcmask 97280   ;;  %vm390_vm2 = vcmask 523264   ;;  %vm671_vm3 = vcmask 261120   ;;  %s1602_s1 = inlined_call_operand.vmem [shape: bf16[12,64], index: 1, kind: input, shape index: {}]   ;;  %s1603_s0 = inlined_call_operand.vmem [shape: f32[256,12], index: 0, kind: input, shape index: {}]   ;;  %s1604_s3 = inlined_call_operand.vmem [shape: bf16[64,32], index: 3, kind: input, shape index: {}]   ;;  %s1605_s5 = inlined_call_operand.vmem [shape: bf16[32,16], index: 5, kind: input, shape index: {}]   ;;  %s1606_s2 = inlined_call_operand.vmem [shape: f32[1,64], index: 2, kind: input, shape index: {}]   ;;  %s1607_s4 = inlined_call_operand.vmem [shape: f32[1,32], index: 4, kind: input, shape index: {}]   ;;  %s1608_s6 = inlined_call_operand.vmem [shape: f32[1,16], index: 6, kind: input, shape index: {}]   ;;  %s1609_s7 = inlined_call_operand.vmem [shape: f32[256,16], index: 7, kind: output, shape index: {}]  }
   0x1   :  { %v1145_v0 = vld [vmem:[%s1602_s1] sm:$0x3f]   ;;  %v28_v2 = vld [vmem:[%s1603_s0 + $0x8] sm:$0xff]  ;;  %v29_v3 = vld [vmem:[%s1603_s0 + $0x10] sm:$0xff]  ;;  %vm881_vm4 = vcmask 130048  }
   0x2   :  { %v27_v1 = vld [vmem:[%s1603_s0] sm:$0xff]  ;;  %1143 = vmatprep.subr.msk.bf16.mxu0 %vm138_vm0, %v1145_v0  ;;  %v140_v4 = vsel %vm138_vm0, %v1145_v0, 0  ;;  %v30_v6 = vld [vmem:[%s1603_s0 + $0x18] sm:$0xff]  ;;  %v32_v8 = vld [vmem:[%s1603_s0 + $0x28] sm:$0xff]  ;;  %1144 = vmatprep.subr.msk.bf16.mxu1 %vm138_vm0, %v1145_v0 }
   0x3   :  { %v59_v5 = vpack.c.bf16 %v28_v2, %v27_v1  ;;  %v31_v7 = vld [vmem:[%s1603_s0 + $0x20] sm:$0xff]  ;;  %1032 = vmatpush3.bf16.msra.mxu0 %v140_v4  ;;  %v60_v9 = vpack.c.bf16 %v30_v6, %v29_v3  ;;  %1142 = vmatpush3.bf16.msra.mxu1 %v140_v4  ;;  %v33_v11 = vld [vmem:[%s1603_s0 + $0x30] sm:$0xff]  ;;  %v34_v12 = vld [vmem:[%s1603_s0 + $0x38] sm:$0xff] }
   0x4   :  { %v61_v10 = vpack.c.bf16 %v32_v8, %v31_v7  ;;  %v43_v13 = vld [vmem:[%s1603_s0 + $0x80] sm:$0xff]  ;;  %v44_v14 = vld [vmem:[%s1603_s0 + $0x88] sm:$0xff]  ;;  %v45_v16 = vld [vmem:[%s1603_s0 + $0x90] sm:$0xff]  ;;  %v62_v24 = vpack.c.bf16 %v34_v12, %v33_v11 }
   0x5   :  { %1033 = vmatprep.mubr.msk.bf16.mxu0 %vm89_vm1, %v59_v5  ;;  %v67_v15 = vpack.c.bf16 %v44_v14, %v43_v13  ;;  %v46_v17 = vld [vmem:[%s1603_s0 + $0x98] sm:$0xff]  ;;  %v47_v18 = vld [vmem:[%s1603_s0 + $0xa0] sm:$0xff]  ;;  %v36_v20 = vld [vmem:[%s1603_s0 + $0x48] sm:$0xff] }
   0x6   :  { %1034 = vmatmul.mubr.msk.bf16.vlgmr.msra.gmra.mrb[0].mxu0 %vm89_vm1, %v60_v9  ;;  %v35_v19 = vld [vmem:[%s1603_s0 + $0x40] sm:$0xff]  ;;  %v68_v21 = vpack.c.bf16 %v46_v17, %v45_v16  ;;  %v48_v22 = vld [vmem:[%s1603_s0 + $0xa8] sm:$0xff]  ;;  %v49_v25 = vld [vmem:[%s1603_s0 + $0xb0] sm:$0xff] }
   0x7   :  { %1037 = vmatprep.mubr.msk.bf16.mxu0 %vm89_vm1, %v61_v10  ;;  %1049 = vmatprep.mubr.msk.bf16.mxu1 %vm89_vm1, %v67_v15  ;;  %v69_v23 = vpack.c.bf16 %v48_v22, %v47_v18  ;;  %v50_v26 = vld [vmem:[%s1603_s0 + $0xb8] sm:$0xff]  ;;  %v63_v27 = vpack.c.bf16 %v36_v20, %v35_v19  ;;  %v51_v28 = vld [vmem:[%s1603_s0 + $0xc0] sm:$0xff]  ;;  %v52_v29 = vld [vmem:[%s1603_s0 + $0xc8] sm:$0xff] }
   0x8   :  { %1050 = vmatmul.mubr.msk.bf16.vlgmr.msra.gmra.mrb[0].mxu1 %vm89_vm1, %v68_v21  ;;  %v1146_v30 = vld [vmem:[%s1604_s3] sm:$0xff]   ;;  %v1147_v31 = vld [vmem:[%s1604_s3 + $0x8] sm:$0xff]   ;;  %v70_v32 = vpack.c.bf16 %v50_v26, %v49_v25  ;;  %v37_v33 = vld [vmem:[%s1603_s0 + $0x50] sm:$0xff]  ;;  %v71_v35 = vpack.c.bf16 %v52_v29, %v51_v28 }
   0x9   :  { %1053 = vmatprep.mubr.msk.bf16.mxu1 %vm89_vm1, %v69_v23  ;;  %1065 = vmatprep.subr.bf16.mxu1 %v1146_v30  ;;  %v38_v34 = vld [vmem:[%s1603_s0 + $0x58] sm:$0xff]  ;;  %v39_v36 = vld [vmem:[%s1603_s0 + $0x60] sm:$0xff]  ;;  %v40_v37 = vld [vmem:[%s1603_s0 + $0x68] sm:$0xff] }
   0xa   :  { %1066 = vmatpush3.bf16.msra.mxu1 %v1146_v30  ;;  %v1148_v38 = vld [vmem:[%s1604_s3 + $0x10] sm:$0xff]   ;;  %v64_v39 = vpack.c.bf16 %v38_v34, %v37_v33  ;;  %v65_v40 = vpack.c.bf16 %v40_v37, %v39_v36  ;;  %v54_v42 = vld [vmem:[%s1603_s0 + $0xd8] sm:$0xff]  ;;  %v55_v43 = vld [vmem:[%s1603_s0 + $0xe0] sm:$0xff] }
   0xb   :  { %1067 = vmatprep.subr.bf16.mxu1 %v1147_v31  ;;  %v53_v41 = vld [vmem:[%s1603_s0 + $0xd0] sm:$0xff]  ;;  %v56_v44 = vld [vmem:[%s1603_s0 + $0xe8] sm:$0xff]  ;;  %v42_v47 = vld [vmem:[%s1603_s0 + $0x78] sm:$0xff] }
   0xc   :  { %v72_v45 = vpack.c.bf16 %v54_v42, %v53_v41  ;;  %v41_v46 = vld [vmem:[%s1603_s0 + $0x70] sm:$0xff]  ;;  %v73_v48 = vpack.c.bf16 %v56_v44, %v55_v43  ;;  %v58_v51 = vld [vmem:[%s1603_s0 + $0xf8] sm:$0xff]  ;;  %v1150_v54 = vld [vmem:[%s1605_s5] sm:$0xff]  }
   0xd   :  { %v66_v49 = vpack.c.bf16 %v42_v47, %v41_v46  ;;  %v57_v50 = vld [vmem:[%s1603_s0 + $0xf0] sm:$0xff]  ;;  %v1149_v53 = vld [vmem:[%s1604_s3 + $0x18] sm:$0xff]   ;;  %v1151_v55 = vld [vmem:[%s1605_s5 + $0x8] sm:$0xff]   ;;  %1105 = vmatprep.subr.bf16.mxu0 %v1150_v54 }
   0xe   :  { %1038 = vmatmul.mubr.msk.bf16.gmra.mrb[4].mxu0 %vm89_vm1, %v62_v24  ;;  %1068 = vmatpush3.bf16.msra.mxu1 %v1147_v31  ;;  %v74_v52 = vpack.c.bf16 %v58_v51, %v57_v50  ;;  %v1328_v56 = vld [vmem:[%s1606_s2] ss:$0 sm:$0xff] }
   0xf   :  { %1041 = vmatprep.mubr.msk.bf16.mxu0 %vm89_vm1, %v63_v27  ;;  %1069 = vmatprep.subr.bf16.mxu1 %v1148_v38 }
  0x10   :  { %1054 = vmatmul.mubr.msk.bf16.gmra.mrb[4].mxu1 %vm89_vm1, %v70_v32  ;;  %1106 = vmatpush3.bf16.msra.mxu0 %v1150_v54 }
  0x11   :  { %1057 = vmatprep.mubr.msk.bf16.mxu1 %vm89_vm1, %v71_v35  ;;  %1107 = vmatprep.subr.bf16.mxu0 %v1151_v55 }
  0x12   :  { %1070 = vmatpush3.bf16.msra.mxu1 %v1148_v38 }
  0x13   :  { %1071 = vmatprep.subr.bf16.mxu1 %v1149_v53 }
  0x14   :  { %1108 = vmatpush3.bf16.msra.mxu0 %v1151_v55 }
  0x16   :  { %1042 = vmatmul.mubr.msk.bf16.gmra.mrb[8].mxu0 %vm89_vm1, %v64_v39  ;;  %1072 = vmatpush3.bf16.msra.mxu1 %v1149_v53 }
  0x17   :  { %1045 = vmatprep.mubr.msk.bf16.mxu0 %vm89_vm1, %v65_v40 }
  0x18   :  { %1058 = vmatmul.mubr.msk.bf16.gmra.mrb[8].mxu1 %vm89_vm1, %v72_v45 }
  0x19   :  { %1061 = vmatprep.mubr.msk.bf16.mxu1 %vm89_vm1, %v73_v48 }
  0x1e   :  { %1046 = vmatmul.mubr.msk.bf16.gmra.mrb[12].mxu0 %vm89_vm1, %v66_v49 }
  0x20   :  { %1062 = vmatmul.mubr.msk.bf16.gmra.mrb[12].mxu1 %vm89_vm1, %v74_v52 }
  0xd9   :  { %v1035_v57 = vpop.f32.mrb[0].mxu0 }
  0xda   :  { %v185_v58 = vadd.f32 %v1035_v57, %v1328_v56  ;;  %v176_v59 = vpop.f32.mrb[1].mxu0 }
  0xdb   :  { %v177_v60 = vadd.f32 %v1328_v56, %v176_v59  ;;  %v1036_v61 = vpop.f32.mrb[2].mxu0  ;;  %v1051_v1 = vpop.f32.mrb[0].mxu1 }
  0xdc   :  { %v188_v62 = vadd.f32 %v1036_v61, %v1328_v56  ;;  %v179_v63 = vpop.f32.mrb[3].mxu0  ;;  %v305_v2 = vmax.f32 %v185_v58, 0.0  ;;  %v249_v4 = vadd.f32 %v1051_v1, %v1328_v56  ;;  %v240_v5 = vpop.f32.mrb[1].mxu1 }
  0xdd   :  { %v180_v0 = vadd.f32 %v1328_v56, %v179_v63  ;;  %v303_v6 = vmax.f32 %v177_v60, 0.0  ;;  %v241_v8 = vadd.f32 %v1328_v56, %v240_v5  ;;  %v1052_v9 = vpop.f32.mrb[2].mxu1 }
  0xde   :  { %v306_v3 = vmax.f32 %v188_v62, 0.0  ;;  %v321_v11 = vmax.f32 %v249_v4, 0.0  ;;  %v252_v12 = vadd.f32 %v1052_v9, %v1328_v56  ;;  %v243_v13 = vpop.f32.mrb[3].mxu1 }
  0xdf   :  { %v304_v7 = vmax.f32 %v180_v0, 0.0  ;;  %v319_v16 = vmax.f32 %v241_v8, 0.0  ;;  %v244_v17 = vadd.f32 %v1328_v56, %v243_v13 }
  0xe0   :  { %v336_v10 = vpack.c.bf16 %v306_v3, %v305_v2  ;;  %v322_v20 = vmax.f32 %v252_v12, 0.0 }
  0xe1   :  { %v335_v14 = vpack.c.bf16 %v304_v7, %v303_v6  ;;  %v1039_v15 = vpop.f32.mrb[4].mxu0  ;;  %v320_v23 = vmax.f32 %v244_v17, 0.0 }
  0xe2   :  { %v201_v18 = vadd.f32 %v1039_v15, %v1328_v56  ;;  %v192_v19 = vpop.f32.mrb[5].mxu0  ;;  %v1343_v26 = vpack.c.bf16 %v322_v20, %v321_v11 }
  0xe3   :  { %v193_v21 = vadd.f32 %v1328_v56, %v192_v19  ;;  %v1040_v22 = vpop.f32.mrb[6].mxu0  ;;  %1073 = vmatprep.mubr.msk.bf16.mxu1 %vm390_vm2, %v335_v14  ;;  %v1346_v28 = vpack.c.bf16 %v320_v23, %v319_v16  ;;  %v1055_v29 = vpop.f32.mrb[4].mxu1 }
  0xe4   :  { %v204_v24 = vadd.f32 %v1040_v22, %v1328_v56  ;;  %v195_v25 = vpop.f32.mrb[7].mxu0  ;;  %1074 = vmatmul.mubr.msk.bf16.vlgmr.msra.gmra.mrb[16].mxu1 %vm390_vm2, %v336_v10  ;;  %v309_v30 = vmax.f32 %v201_v18, 0.0  ;;  %v265_v32 = vadd.f32 %v1055_v29, %v1328_v56  ;;  %v256_v33 = vpop.f32.mrb[5].mxu1 }
  0xe5   :  { %v196_v27 = vadd.f32 %v1328_v56, %v195_v25  ;;  %v307_v34 = vmax.f32 %v193_v21, 0.0  ;;  %v257_v36 = vadd.f32 %v1328_v56, %v256_v33  ;;  %v1056_v37 = vpop.f32.mrb[6].mxu1 }
  0xe6   :  { %v310_v31 = vmax.f32 %v204_v24, 0.0  ;;  %v325_v39 = vmax.f32 %v265_v32, 0.0  ;;  %v268_v40 = vadd.f32 %v1056_v37, %v1328_v56  ;;  %v259_v41 = vpop.f32.mrb[7].mxu1 }
  0xe7   :  { %v308_v35 = vmax.f32 %v196_v27, 0.0  ;;  %v323_v44 = vmax.f32 %v257_v36, 0.0  ;;  %v260_v45 = vadd.f32 %v1328_v56, %v259_v41 }
  0xe8   :  { %v338_v38 = vpack.c.bf16 %v310_v31, %v309_v30  ;;  %v326_v48 = vmax.f32 %v268_v40, 0.0 }
  0xe9   :  { %v337_v42 = vpack.c.bf16 %v308_v35, %v307_v34  ;;  %v1043_v43 = vpop.f32.mrb[8].mxu0  ;;  %v324_v51 = vmax.f32 %v260_v45, 0.0 }
  0xea   :  { %v217_v46 = vadd.f32 %v1043_v43, %v1328_v56  ;;  %v208_v47 = vpop.f32.mrb[9].mxu0  ;;  %v346_v54 = vpack.c.bf16 %v326_v48, %v325_v39 }
  0xeb   :  { %v209_v49 = vadd.f32 %v1328_v56, %v208_v47  ;;  %v1044_v50 = vpop.f32.mrb[10].mxu0  ;;  %1077 = vmatprep.mubr.msk.bf16.mxu1 %vm390_vm2, %v337_v42  ;;  %v345_v57 = vpack.c.bf16 %v324_v51, %v323_v44  ;;  %v1059_v58 = vpop.f32.mrb[8].mxu1 }
  0xec   :  { %v220_v52 = vadd.f32 %v1044_v50, %v1328_v56  ;;  %v211_v53 = vpop.f32.mrb[11].mxu0  ;;  %1078 = vmatmul.mubr.msk.bf16.gmra.mrb[20].mxu1 %vm390_vm2, %v338_v38  ;;  %v313_v59 = vmax.f32 %v217_v46, 0.0  ;;  %v281_v61 = vadd.f32 %v1059_v58, %v1328_v56  ;;  %v272_v62 = vpop.f32.mrb[9].mxu1 }
  0xed   :  { %v212_v55 = vadd.f32 %v1328_v56, %v211_v53  ;;  %v311_v63 = vmax.f32 %v209_v49, 0.0  ;;  %v273_v1 = vadd.f32 %v1328_v56, %v272_v62  ;;  %v1060_v2 = vpop.f32.mrb[10].mxu1 }
  0xee   :  { %v314_v60 = vmax.f32 %v220_v52, 0.0  ;;  %v329_v4 = vmax.f32 %v281_v61, 0.0  ;;  %v284_v5 = vadd.f32 %v1060_v2, %v1328_v56  ;;  %v275_v6 = vpop.f32.mrb[11].mxu1 }
  0xef   :  { %v312_v0 = vmax.f32 %v212_v55, 0.0  ;;  %v327_v9 = vmax.f32 %v273_v1, 0.0  ;;  %v276_v10 = vadd.f32 %v1328_v56, %v275_v6 }
  0xf0   :  { %v340_v3 = vpack.c.bf16 %v314_v60, %v313_v59  ;;  %v330_v13 = vmax.f32 %v284_v5, 0.0 }
  0xf1   :  { %v339_v7 = vpack.c.bf16 %v312_v0, %v311_v63  ;;  %v1047_v8 = vpop.f32.mrb[12].mxu0  ;;  %v328_v16 = vmax.f32 %v276_v10, 0.0 }
  0xf2   :  { %v233_v11 = vadd.f32 %v1047_v8, %v1328_v56  ;;  %v224_v12 = vpop.f32.mrb[13].mxu0  ;;  %v348_v19 = vpack.c.bf16 %v330_v13, %v329_v4 }
  0xf3   :  { %v225_v14 = vadd.f32 %v1328_v56, %v224_v12  ;;  %v1048_v15 = vpop.f32.mrb[14].mxu0  ;;  %1081 = vmatprep.mubr.msk.bf16.mxu1 %vm390_vm2, %v339_v7  ;;  %v347_v21 = vpack.c.bf16 %v328_v16, %v327_v9  ;;  %v1063_v22 = vpop.f32.mrb[12].mxu1 }
  0xf4   :  { %v236_v17 = vadd.f32 %v1048_v15, %v1328_v56  ;;  %v227_v18 = vpop.f32.mrb[15].mxu0  ;;  %1082 = vmatmul.mubr.msk.bf16.gmra.mrb[24].mxu1 %vm390_vm2, %v340_v3  ;;  %v317_v23 = vmax.f32 %v233_v11, 0.0  ;;  %v297_v25 = vadd.f32 %v1063_v22, %v1328_v56  ;;  %v288_v27 = vpop.f32.mrb[13].mxu1 }
  0xf5   :  { %v228_v20 = vadd.f32 %v1328_v56, %v227_v18  ;;  %v315_v29 = vmax.f32 %v225_v14, 0.0  ;;  %v289_v31 = vadd.f32 %v1328_v56, %v288_v27  ;;  %v1064_v32 = vpop.f32.mrb[14].mxu1 }
  0xf6   :  { %v318_v24 = vmax.f32 %v236_v17, 0.0  ;;  %v333_v34 = vmax.f32 %v297_v25, 0.0  ;;  %v300_v35 = vadd.f32 %v1064_v32, %v1328_v56  ;;  %v291_v36 = vpop.f32.mrb[15].mxu1 }
  0xf7   :  { %v316_v30 = vmax.f32 %v228_v20, 0.0  ;;  %v331_v38 = vmax.f32 %v289_v31, 0.0  ;;  %v292_v39 = vadd.f32 %v1328_v56, %v291_v36  ;;  %v1387_v56 = vld [vmem:[%s1607_s4] ss:$0 sm:$0xff] }
  0xf8   :  { %v342_v33 = vpack.c.bf16 %v318_v24, %v317_v23  ;;  %v334_v40 = vmax.f32 %v300_v35, 0.0 }
  0xf9   :  { %v341_v37 = vpack.c.bf16 %v316_v30, %v315_v29  ;;  %v332_v41 = vmax.f32 %v292_v39, 0.0 }
  0xfa   :  { %v350_v42 = vpack.c.bf16 %v334_v40, %v333_v34 }
  0xfb   :  { %1085 = vmatprep.mubr.msk.bf16.mxu1 %vm390_vm2, %v341_v37  ;;  %v349_v43 = vpack.c.bf16 %v332_v41, %v331_v38 }
  0xfc   :  { %1086 = vmatmul.mubr.msk.bf16.gmra.mrb[28].mxu1 %vm390_vm2, %v342_v33 }
  0xfd   :  { %1089 = vmatprep.mubr.msk.bf16.mxu1 %vm390_vm2, %v1346_v28 }
 0x104   :  { %1090 = vmatmul.mubr.msk.bf16.gmra.mrb[32].mxu1 %vm390_vm2, %v1343_v26 }
 0x105   :  { %1093 = vmatprep.mubr.msk.bf16.mxu1 %vm390_vm2, %v345_v57 }
 0x10c   :  { %1094 = vmatmul.mubr.msk.bf16.gmra.mrb[36].mxu1 %vm390_vm2, %v346_v54 }
 0x10d   :  { %1097 = vmatprep.mubr.msk.bf16.mxu1 %vm390_vm2, %v347_v21 }
 0x114   :  { %1098 = vmatmul.mubr.msk.bf16.gmra.mrb[40].mxu1 %vm390_vm2, %v348_v19 }
 0x115   :  { %1101 = vmatprep.mubr.msk.bf16.mxu1 %vm390_vm2, %v349_v43 }
 0x11c   :  { %1102 = vmatmul.mubr.msk.bf16.gmra.mrb[44].mxu1 %vm390_vm2, %v350_v42 }
 0x1b7   :  { %v1075_v28 = vpop.f32.mrb[16].mxu1 }
 0x1b8   :  { %v482_v26 = vadd.f32 %v1075_v28, %v1387_v56  ;;  %v473_v44 = vpop.f32.mrb[17].mxu1 }
 0x1b9   :  { %v474_v45 = vadd.f32 %v1387_v56, %v473_v44  ;;  %v1076_v46 = vpop.f32.mrb[18].mxu1 }
 0x1ba   :  { %v485_v47 = vadd.f32 %v1076_v46, %v1387_v56  ;;  %v476_v48 = vpop.f32.mrb[19].mxu1  ;;  %v602_v50 = vmax.f32 %v482_v26, 0.0 }
 0x1bb   :  { %v477_v49 = vadd.f32 %v1387_v56, %v476_v48  ;;  %v600_v52 = vmax.f32 %v474_v45, 0.0 }
 0x1bc   :  { %v603_v51 = vmax.f32 %v485_v47, 0.0 }
 0x1bd   :  { %v601_v53 = vmax.f32 %v477_v49, 0.0 }
 0x1be   :  { %v633_v54 = vpack.c.bf16 %v603_v51, %v602_v50 }
 0x1bf   :  { %v632_v55 = vpack.c.bf16 %v601_v53, %v600_v52  ;;  %v1079_v57 = vpop.f32.mrb[20].mxu1 }
 0x1c0   :  { %v498_v58 = vadd.f32 %v1079_v57, %v1387_v56  ;;  %v489_v59 = vpop.f32.mrb[21].mxu1 }
 0x1c1   :  { %v490_v60 = vadd.f32 %v1387_v56, %v489_v59  ;;  %v1080_v61 = vpop.f32.mrb[22].mxu1  ;;  %1109 = vmatprep.mubr.msk.bf16.mxu0 %vm671_vm3, %v632_v55 }
 0x1c2   :  { %v501_v62 = vadd.f32 %v1080_v61, %v1387_v56  ;;  %v492_v63 = vpop.f32.mrb[23].mxu1  ;;  %1110 = vmatmul.mubr.msk.bf16.vlgmr.msra.gmra.mrb[16].mxu0 %vm671_vm3, %v633_v54  ;;  %v606_v1 = vmax.f32 %v498_v58, 0.0 }
 0x1c3   :  { %v493_v0 = vadd.f32 %v1387_v56, %v492_v63  ;;  %v604_v3 = vmax.f32 %v490_v60, 0.0 }
 0x1c4   :  { %v607_v2 = vmax.f32 %v501_v62, 0.0 }
 0x1c5   :  { %v605_v4 = vmax.f32 %v493_v0, 0.0 }
 0x1c6   :  { %v635_v5 = vpack.c.bf16 %v607_v2, %v606_v1 }
 0x1c7   :  { %v634_v6 = vpack.c.bf16 %v605_v4, %v604_v3  ;;  %v1083_v7 = vpop.f32.mrb[24].mxu1 }
 0x1c8   :  { %v514_v8 = vadd.f32 %v1083_v7, %v1387_v56  ;;  %v505_v9 = vpop.f32.mrb[25].mxu1 }
 0x1c9   :  { %v506_v10 = vadd.f32 %v1387_v56, %v505_v9  ;;  %v1084_v11 = vpop.f32.mrb[26].mxu1  ;;  %1113 = vmatprep.mubr.msk.bf16.mxu0 %vm671_vm3, %v634_v6 }
 0x1ca   :  { %v517_v12 = vadd.f32 %v1084_v11, %v1387_v56  ;;  %v508_v13 = vpop.f32.mrb[27].mxu1  ;;  %1114 = vmatmul.mubr.msk.bf16.gmra.mrb[20].mxu0 %vm671_vm3, %v635_v5  ;;  %v610_v15 = vmax.f32 %v514_v8, 0.0 }
 0x1cb   :  { %v509_v14 = vadd.f32 %v1387_v56, %v508_v13  ;;  %v608_v17 = vmax.f32 %v506_v10, 0.0 }
 0x1cc   :  { %v611_v16 = vmax.f32 %v517_v12, 0.0 }
 0x1cd   :  { %v609_v18 = vmax.f32 %v509_v14, 0.0 }
 0x1ce   :  { %v637_v19 = vpack.c.bf16 %v611_v16, %v610_v15 }
 0x1cf   :  { %v636_v20 = vpack.c.bf16 %v609_v18, %v608_v17  ;;  %v1087_v21 = vpop.f32.mrb[28].mxu1 }
 0x1d0   :  { %v530_v22 = vadd.f32 %v1087_v21, %v1387_v56  ;;  %v521_v23 = vpop.f32.mrb[29].mxu1 }
 0x1d1   :  { %v522_v24 = vadd.f32 %v1387_v56, %v521_v23  ;;  %v1088_v25 = vpop.f32.mrb[30].mxu1  ;;  %1117 = vmatprep.mubr.msk.bf16.mxu0 %vm671_vm3, %v636_v20 }
 0x1d2   :  { %v533_v27 = vadd.f32 %v1088_v25, %v1387_v56  ;;  %v524_v29 = vpop.f32.mrb[31].mxu1  ;;  %1118 = vmatmul.mubr.msk.bf16.gmra.mrb[24].mxu0 %vm671_vm3, %v637_v19  ;;  %v614_v31 = vmax.f32 %v530_v22, 0.0 }
 0x1d3   :  { %v525_v30 = vadd.f32 %v1387_v56, %v524_v29  ;;  %v612_v33 = vmax.f32 %v522_v24, 0.0 }
 0x1d4   :  { %v615_v32 = vmax.f32 %v533_v27, 0.0 }
 0x1d5   :  { %v613_v34 = vmax.f32 %v525_v30, 0.0  ;;  %v1440_v30 = vld [vmem:[%s1608_s6] ss:$0 sm:$0xff] }
 0x1d6   :  { %v639_v35 = vpack.c.bf16 %v615_v32, %v614_v31 }
 0x1d7   :  { %v638_v36 = vpack.c.bf16 %v613_v34, %v612_v33  ;;  %v1091_v37 = vpop.f32.mrb[32].mxu1 }
 0x1d8   :  { %v546_v38 = vadd.f32 %v1091_v37, %v1387_v56  ;;  %v537_v39 = vpop.f32.mrb[33].mxu1 }
 0x1d9   :  { %v538_v40 = vadd.f32 %v1387_v56, %v537_v39  ;;  %v1092_v41 = vpop.f32.mrb[34].mxu1  ;;  %1121 = vmatprep.mubr.msk.bf16.mxu0 %vm671_vm3, %v638_v36 }
 0x1da   :  { %v549_v42 = vadd.f32 %v1092_v41, %v1387_v56  ;;  %v540_v43 = vpop.f32.mrb[35].mxu1  ;;  %1122 = vmatmul.mubr.msk.bf16.gmra.mrb[28].mxu0 %vm671_vm3, %v639_v35  ;;  %v618_v26 = vmax.f32 %v546_v38, 0.0 }
 0x1db   :  { %v541_v28 = vadd.f32 %v1387_v56, %v540_v43  ;;  %v616_v45 = vmax.f32 %v538_v40, 0.0 }
 0x1dc   :  { %v619_v44 = vmax.f32 %v549_v42, 0.0 }
 0x1dd   :  { %v617_v46 = vmax.f32 %v541_v28, 0.0 }
 0x1de   :  { %v641_v47 = vpack.c.bf16 %v619_v44, %v618_v26 }
 0x1df   :  { %v640_v48 = vpack.c.bf16 %v617_v46, %v616_v45  ;;  %v1095_v49 = vpop.f32.mrb[36].mxu1 }
 0x1e0   :  { %v562_v50 = vadd.f32 %v1095_v49, %v1387_v56  ;;  %v553_v51 = vpop.f32.mrb[37].mxu1 }
 0x1e1   :  { %v554_v52 = vadd.f32 %v1387_v56, %v553_v51  ;;  %v1096_v53 = vpop.f32.mrb[38].mxu1  ;;  %1125 = vmatprep.mubr.msk.bf16.mxu0 %vm671_vm3, %v640_v48 }
 0x1e2   :  { %v565_v54 = vadd.f32 %v1096_v53, %v1387_v56  ;;  %v556_v55 = vpop.f32.mrb[39].mxu1  ;;  %1126 = vmatmul.mubr.msk.bf16.gmra.mrb[32].mxu0 %vm671_vm3, %v641_v47  ;;  %v622_v58 = vmax.f32 %v562_v50, 0.0 }
 0x1e3   :  { %v557_v57 = vadd.f32 %v1387_v56, %v556_v55  ;;  %v620_v60 = vmax.f32 %v554_v52, 0.0 }
 0x1e4   :  { %v623_v59 = vmax.f32 %v565_v54, 0.0 }
 0x1e5   :  { %v621_v61 = vmax.f32 %v557_v57, 0.0 }
 0x1e6   :  { %v643_v62 = vpack.c.bf16 %v623_v59, %v622_v58 }
 0x1e7   :  { %v642_v63 = vpack.c.bf16 %v621_v61, %v620_v60  ;;  %v1099_v0 = vpop.f32.mrb[40].mxu1 }
 0x1e8   :  { %v578_v1 = vadd.f32 %v1099_v0, %v1387_v56  ;;  %v569_v2 = vpop.f32.mrb[41].mxu1 }
 0x1e9   :  { %v570_v3 = vadd.f32 %v1387_v56, %v569_v2  ;;  %v1100_v4 = vpop.f32.mrb[42].mxu1  ;;  %1129 = vmatprep.mubr.msk.bf16.mxu0 %vm671_vm3, %v642_v63 }
 0x1ea   :  { %v581_v5 = vadd.f32 %v1100_v4, %v1387_v56  ;;  %v572_v6 = vpop.f32.mrb[43].mxu1  ;;  %1130 = vmatmul.mubr.msk.bf16.gmra.mrb[36].mxu0 %vm671_vm3, %v643_v62  ;;  %v626_v8 = vmax.f32 %v578_v1, 0.0 }
 0x1eb   :  { %v573_v7 = vadd.f32 %v1387_v56, %v572_v6  ;;  %v624_v10 = vmax.f32 %v570_v3, 0.0 }
 0x1ec   :  { %v627_v9 = vmax.f32 %v581_v5, 0.0 }
 0x1ed   :  { %v625_v11 = vmax.f32 %v573_v7, 0.0 }
 0x1ee   :  { %v645_v12 = vpack.c.bf16 %v627_v9, %v626_v8 }
 0x1ef   :  { %v644_v13 = vpack.c.bf16 %v625_v11, %v624_v10  ;;  %v1103_v14 = vpop.f32.mrb[44].mxu1 }
 0x1f0   :  { %v594_v15 = vadd.f32 %v1103_v14, %v1387_v56  ;;  %v585_v16 = vpop.f32.mrb[45].mxu1 }
 0x1f1   :  { %v586_v17 = vadd.f32 %v1387_v56, %v585_v16  ;;  %v1104_v18 = vpop.f32.mrb[46].mxu1  ;;  %1133 = vmatprep.mubr.msk.bf16.mxu0 %vm671_vm3, %v644_v13 }
 0x1f2   :  { %v597_v19 = vadd.f32 %v1104_v18, %v1387_v56  ;;  %v588_v20 = vpop.f32.mrb[47].mxu1  ;;  %1134 = vmatmul.mubr.msk.bf16.gmra.mrb[40].mxu0 %vm671_vm3, %v645_v12  ;;  %v630_v22 = vmax.f32 %v594_v15, 0.0 }
 0x1f3   :  { %v589_v21 = vadd.f32 %v1387_v56, %v588_v20  ;;  %v628_v24 = vmax.f32 %v586_v17, 0.0 }
 0x1f4   :  { %v631_v23 = vmax.f32 %v597_v19, 0.0 }
 0x1f5   :  { %v629_v25 = vmax.f32 %v589_v21, 0.0 }
 0x1f6   :  { %v647_v27 = vpack.c.bf16 %v631_v23, %v630_v22 }
 0x1f7   :  { %v646_v29 = vpack.c.bf16 %v629_v25, %v628_v24 }
 0x1f9   :  { %1137 = vmatprep.mubr.msk.bf16.mxu0 %vm671_vm3, %v646_v29 }
 0x1fa   :  { %1138 = vmatmul.mubr.msk.bf16.gmra.mrb[44].mxu0 %vm671_vm3, %v647_v27 }
 0x295   :  { %v1111_v31 = vpop.f32.mrb[16].mxu0 }
 0x296   :  { %v763_v32 = vadd.f32 %v1111_v31, %v1440_v30  ;;  %v754_v56 = vpop.f32.mrb[17].mxu0 }
 0x297   :  { %v755_v33 = vadd.f32 %v1440_v30, %v754_v56  ;;  %v1112_v34 = vpop.f32.mrb[18].mxu0 }
 0x298   :  { %884 = vst.msk [vmem:[%s1609_s7 + $0x10] sm:$0xff] %vm881_vm4, %v763_v32  ;;  %v766_v35 = vadd.f32 %v1112_v34, %v1440_v30  ;;  %v757_v36 = vpop.f32.mrb[19].mxu0 }
 0x299   :  { %882 = vst.msk [vmem:[%s1609_s7] sm:$0xff] %vm881_vm4, %v755_v33  ;;  %v758_v37 = vadd.f32 %v1440_v30, %v757_v36 }
 0x29a   :  { %885 = vst.msk [vmem:[%s1609_s7 + $0x18] sm:$0xff] %vm881_vm4, %v766_v35 }
 0x29b   :  { %883 = vst.msk [vmem:[%s1609_s7 + $0x8] sm:$0xff] %vm881_vm4, %v758_v37 }
 0x29d   :  { %v1115_v38 = vpop.f32.mrb[20].mxu0 }
 0x29e   :  { %v779_v39 = vadd.f32 %v1115_v38, %v1440_v30  ;;  %v770_v40 = vpop.f32.mrb[21].mxu0 }
 0x29f   :  { %v771_v41 = vadd.f32 %v1440_v30, %v770_v40  ;;  %v1116_v42 = vpop.f32.mrb[22].mxu0 }
 0x2a0   :  { %888 = vst.msk [vmem:[%s1609_s7 + $0x30] sm:$0xff] %vm881_vm4, %v779_v39  ;;  %v782_v43 = vadd.f32 %v1116_v42, %v1440_v30  ;;  %v773_v28 = vpop.f32.mrb[23].mxu0 }
 0x2a1   :  { %886 = vst.msk [vmem:[%s1609_s7 + $0x20] sm:$0xff] %vm881_vm4, %v771_v41  ;;  %v774_v26 = vadd.f32 %v1440_v30, %v773_v28 }
 0x2a2   :  { %889 = vst.msk [vmem:[%s1609_s7 + $0x38] sm:$0xff] %vm881_vm4, %v782_v43 }
 0x2a3   :  { %887 = vst.msk [vmem:[%s1609_s7 + $0x28] sm:$0xff] %vm881_vm4, %v774_v26 }
 0x2a5   :  { %v1119_v44 = vpop.f32.mrb[24].mxu0 }
 0x2a6   :  { %v795_v45 = vadd.f32 %v1119_v44, %v1440_v30  ;;  %v786_v46 = vpop.f32.mrb[25].mxu0 }
 0x2a7   :  { %v787_v47 = vadd.f32 %v1440_v30, %v786_v46  ;;  %v1120_v48 = vpop.f32.mrb[26].mxu0 }
 0x2a8   :  { %892 = vst.msk [vmem:[%s1609_s7 + $0x50] sm:$0xff] %vm881_vm4, %v795_v45  ;;  %v798_v49 = vadd.f32 %v1120_v48, %v1440_v30  ;;  %v789_v50 = vpop.f32.mrb[27].mxu0 }
 0x2a9   :  { %890 = vst.msk [vmem:[%s1609_s7 + $0x40] sm:$0xff] %vm881_vm4, %v787_v47  ;;  %v790_v51 = vadd.f32 %v1440_v30, %v789_v50 }
 0x2aa   :  { %893 = vst.msk [vmem:[%s1609_s7 + $0x58] sm:$0xff] %vm881_vm4, %v798_v49 }
 0x2ab   :  { %891 = vst.msk [vmem:[%s1609_s7 + $0x48] sm:$0xff] %vm881_vm4, %v790_v51 }
 0x2ad   :  { %v1123_v52 = vpop.f32.mrb[28].mxu0 }
 0x2ae   :  { %v811_v53 = vadd.f32 %v1123_v52, %v1440_v30  ;;  %v802_v54 = vpop.f32.mrb[29].mxu0 }
 0x2af   :  { %v803_v55 = vadd.f32 %v1440_v30, %v802_v54  ;;  %v1124_v57 = vpop.f32.mrb[30].mxu0 }
 0x2b0   :  { %896 = vst.msk [vmem:[%s1609_s7 + $0x70] sm:$0xff] %vm881_vm4, %v811_v53  ;;  %v814_v58 = vadd.f32 %v1124_v57, %v1440_v30  ;;  %v805_v59 = vpop.f32.mrb[31].mxu0 }
 0x2b1   :  { %894 = vst.msk [vmem:[%s1609_s7 + $0x60] sm:$0xff] %vm881_vm4, %v803_v55  ;;  %v806_v60 = vadd.f32 %v1440_v30, %v805_v59 }
 0x2b2   :  { %897 = vst.msk [vmem:[%s1609_s7 + $0x78] sm:$0xff] %vm881_vm4, %v814_v58 }
 0x2b3   :  { %895 = vst.msk [vmem:[%s1609_s7 + $0x68] sm:$0xff] %vm881_vm4, %v806_v60 }
 0x2b5   :  { %v1127_v61 = vpop.f32.mrb[32].mxu0 }
 0x2b6   :  { %v827_v62 = vadd.f32 %v1127_v61, %v1440_v30  ;;  %v818_v63 = vpop.f32.mrb[33].mxu0 }
 0x2b7   :  { %v819_v0 = vadd.f32 %v1440_v30, %v818_v63  ;;  %v1128_v1 = vpop.f32.mrb[34].mxu0 }
 0x2b8   :  { %900 = vst.msk [vmem:[%s1609_s7 + $0x90] sm:$0xff] %vm881_vm4, %v827_v62  ;;  %v830_v2 = vadd.f32 %v1128_v1, %v1440_v30  ;;  %v821_v3 = vpop.f32.mrb[35].mxu0 }
 0x2b9   :  { %898 = vst.msk [vmem:[%s1609_s7 + $0x80] sm:$0xff] %vm881_vm4, %v819_v0  ;;  %v822_v4 = vadd.f32 %v1440_v30, %v821_v3 }
 0x2ba   :  { %901 = vst.msk [vmem:[%s1609_s7 + $0x98] sm:$0xff] %vm881_vm4, %v830_v2 }
 0x2bb   :  { %899 = vst.msk [vmem:[%s1609_s7 + $0x88] sm:$0xff] %vm881_vm4, %v822_v4 }
 0x2bd   :  { %v1131_v5 = vpop.f32.mrb[36].mxu0 }
 0x2be   :  { %v843_v6 = vadd.f32 %v1131_v5, %v1440_v30  ;;  %v834_v7 = vpop.f32.mrb[37].mxu0 }
 0x2bf   :  { %v835_v8 = vadd.f32 %v1440_v30, %v834_v7  ;;  %v1132_v9 = vpop.f32.mrb[38].mxu0 }
 0x2c0   :  { %904 = vst.msk [vmem:[%s1609_s7 + $0xb0] sm:$0xff] %vm881_vm4, %v843_v6  ;;  %v846_v10 = vadd.f32 %v1132_v9, %v1440_v30  ;;  %v837_v11 = vpop.f32.mrb[39].mxu0 }
 0x2c1   :  { %902 = vst.msk [vmem:[%s1609_s7 + $0xa0] sm:$0xff] %vm881_vm4, %v835_v8  ;;  %v838_v12 = vadd.f32 %v1440_v30, %v837_v11 }
 0x2c2   :  { %905 = vst.msk [vmem:[%s1609_s7 + $0xb8] sm:$0xff] %vm881_vm4, %v846_v10 }
 0x2c3   :  { %903 = vst.msk [vmem:[%s1609_s7 + $0xa8] sm:$0xff] %vm881_vm4, %v838_v12 }
 0x2c5   :  { %v1135_v13 = vpop.f32.mrb[40].mxu0 }
 0x2c6   :  { %v859_v14 = vadd.f32 %v1135_v13, %v1440_v30  ;;  %v850_v15 = vpop.f32.mrb[41].mxu0 }
 0x2c7   :  { %v851_v16 = vadd.f32 %v1440_v30, %v850_v15  ;;  %v1136_v17 = vpop.f32.mrb[42].mxu0 }
 0x2c8   :  { %908 = vst.msk [vmem:[%s1609_s7 + $0xd0] sm:$0xff] %vm881_vm4, %v859_v14  ;;  %v862_v18 = vadd.f32 %v1136_v17, %v1440_v30  ;;  %v853_v19 = vpop.f32.mrb[43].mxu0 }
 0x2c9   :  { %906 = vst.msk [vmem:[%s1609_s7 + $0xc0] sm:$0xff] %vm881_vm4, %v851_v16  ;;  %v854_v20 = vadd.f32 %v1440_v30, %v853_v19 }
 0x2ca   :  { %909 = vst.msk [vmem:[%s1609_s7 + $0xd8] sm:$0xff] %vm881_vm4, %v862_v18 }
 0x2cb   :  { %907 = vst.msk [vmem:[%s1609_s7 + $0xc8] sm:$0xff] %vm881_vm4, %v854_v20 }
 0x2cd   :  { %v1139_v21 = vpop.f32.mrb[44].mxu0 }
 0x2ce   :  { %v875_v22 = vadd.f32 %v1139_v21, %v1440_v30  ;;  %v866_v23 = vpop.f32.mrb[45].mxu0 }
 0x2cf   :  { %v867_v24 = vadd.f32 %v1440_v30, %v866_v23  ;;  %v1140_v25 = vpop.f32.mrb[46].mxu0 }
 0x2d0   :  { %912 = vst.msk [vmem:[%s1609_s7 + $0xf0] sm:$0xff] %vm881_vm4, %v875_v22  ;;  %v878_v27 = vadd.f32 %v1140_v25, %v1440_v30  ;;  %v869_v29 = vpop.f32.mrb[47].mxu0 }
 0x2d1   :  { %910 = vst.msk [vmem:[%s1609_s7 + $0xe0] sm:$0xff] %vm881_vm4, %v867_v24  ;;  %v870_v31 = vadd.f32 %v1440_v30, %v869_v29 }
 0x2d2   :  { %913 = vst.msk [vmem:[%s1609_s7 + $0xf8] sm:$0xff] %vm881_vm4, %v878_v27 }
 0x2d3   :  { %911 = vst.msk [vmem:[%s1609_s7 + $0xe8] sm:$0xff] %vm881_vm4, %v870_v31 }

</bundles_post_ra>
